<compile_context>
chip_gen: v5e
topology: v5e:2x2
jax: 0.10.0
libtpu: 0.0.40
codegen_flags: <defaults>
</compile_context>

<pallas_src>
import math

import jax
import jax.numpy as jnp
from jax.experimental import pallas as pl
from jax.experimental.pallas import tpu as pltpu


# ---------------------------------------------------------------------------
# Kernel: one fused fc1 -> fc2 pass over a (tb, d_in) row tile.
# ---------------------------------------------------------------------------
def _mlp_kernel(x_ref, w1_ref, b1_ref, w2_ref, b2_ref, o_ref):
    """fc1: (tb, d_in) @ (d_in, d_hid) + (1, d_hid) -> f32
       fc2: (tb, d_hid) @ (d_hid, d_in) + (1, d_in) -> out dtype
       The f32 accumulator is kept between the two MXU passes (never narrowed).
    """
    h = jnp.dot(x_ref[...], w1_ref[...], preferred_element_type=jnp.float32)
    h = h + b1_ref[...].astype(jnp.float32)

    w2 = w2_ref[...]
    if w2.dtype != jnp.float32:
        # Widen narrow weights instead of narrowing the f32 accumulator.
        w2 = w2.astype(jnp.float32)

    y = jnp.dot(h, w2, preferred_element_type=jnp.float32)
    y = y + b2_ref[...].astype(jnp.float32)
    o_ref[...] = y.astype(o_ref.dtype)


# ---------------------------------------------------------------------------
# pallas_call wrapper: grid over rows only, weights/biases stay VMEM-resident.
# ---------------------------------------------------------------------------
def _round_down8(n):
    return max(8, (n // 8) * 8)


def _pallas_mlp(x, w1, b1, w2, b2, block_rows=None):
    R, d_in = x.shape
    d_in_w, d_hid = w1.shape
    assert d_in == d_in_w and w2.shape == (d_hid, d_in)
    assert b1.shape == (1, d_hid) and b2.shape == (1, d_in)

    itemsize = x.dtype.itemsize
    x_bytes = R * d_in * itemsize

    if block_rows is None:
        if x_bytes <= (2 << 20):
            # Small slab: one full-array block (fastest on single-TC v5e/v6e).
            block_rows = R
        else:
            # Large slab: ~4 MiB tiles, but at least 2 tiles so the "parallel"
            # batch axis can shard across v7x's two TensorCores.
            rows_4mib = _round_down8((4 << 20) // (d_in * itemsize))
            rows_half = _round_down8(-(-pl.cdiv(R, 2) // 8) * 8)
            block_rows = min(rows_4mib, rows_half)

    tb = min(block_rows, R)
    if tb < R:
        tb = _round_down8(tb)          # sublane-multiple required for tiled blocks
    grid = (pl.cdiv(R, tb),)           # ragged final block is masked by Pallas

    flops = 4 * R * d_in * d_hid       # two matmuls, 2*M*N*K each
    bytes_accessed = (
        x_bytes
        + w1.size * w1.dtype.itemsize + w2.size * w2.dtype.itemsize
        + b1.size * b1.dtype.itemsize + b2.size * b2.dtype.itemsize
        + R * d_in * itemsize          # output writeback
    )

    return pl.pallas_call(
        _mlp_kernel,
        out_shape=jax.ShapeDtypeStruct((R, d_in), x.dtype),
        grid=grid,
        in_specs=[
            pl.BlockSpec((tb, d_in), lambda i: (i, 0)),    # x: streams per tile
            pl.BlockSpec((d_in, d_hid), lambda i: (0, 0)),  # w1: VMEM-resident
            pl.BlockSpec((1, d_hid), lambda i: (0, 0)),     # b1: VMEM-resident
            pl.BlockSpec((d_hid, d_in), lambda i: (0, 0)),  # w2: VMEM-resident
            pl.BlockSpec((1, d_in), lambda i: (0, 0)),      # b2: VMEM-resident
        ],
        out_specs=pl.BlockSpec((tb, d_in), lambda i: (i, 0)),
        compiler_params=pltpu.CompilerParams(
            dimension_semantics=("parallel",)),
        cost_estimate=pl.CostEstimate(
            flops=flops, transcendentals=0, bytes_accessed=bytes_accessed),
    )(x, w1, b1, w2, b2)


# ---------------------------------------------------------------------------
# Lane-density fold: smallest f with f*in_dim a multiple of 128 lanes.
# ---------------------------------------------------------------------------
def _fold_factor(in_dim, max_fold=8):
    if in_dim % 128 == 0:
        return 1
    f = 128 // math.gcd(in_dim, 128)
    return f if f <= max_fold else 1


# ---------------------------------------------------------------------------
# Public forward + parameter init (PyTorch MyModule semantics).
# ---------------------------------------------------------------------------
def my_module_forward(x, params, *, block_rows=None):
    """x: (B, input_dim) -> (B, input_dim), identical math to
    fc2(fc1(x)) with torch.nn.Linear layers."""
    B, in_dim = x.shape
    fold = params["fold"]

    if fold > 1 and B % fold == 0:
        # Free row-major reshape: (B, in_dim) -> (B/fold, fold*in_dim).
        # Same bytes, now lane-dense (last dim is a multiple of 128).
        xf = x.reshape(B // fold, fold * in_dim)
        yf = _pallas_mlp(xf, params["w1t_f"], params["b1_f"],
                         params["w2t_f"], params["b2_f"], block_rows)
        return yf.reshape(B, in_dim)

    # Fallback: batch not divisible by fold factor (or no clean fold).
    return _pallas_mlp(x, params["w1t"], params["b1"],
                       params["w2t"], params["b2"], block_rows)


def init_my_module_params(key, input_dim, output_dim, dtype=jnp.float32):
    """Mimics torch.nn.Linear.reset_parameters (uniform +/- 1/sqrt(fan_in)).
    Weights stored PRE-TRANSPOSED as (in, out); biases as (1, out) rows.
    Also stores one-time block-diagonal kron(I_fold, W) copies for the
    lane-dense folded forward path (built once here, never per call)."""
    k1, k2 = jax.random.split(key)

    def linear(k, fan_in, fan_out):
        kw, kb = jax.random.split(k)
        bound = 1.0 / (fan_in ** 0.5)
        wt = jax.random.uniform(kw, (fan_in, fan_out), dtype,
                                minval=-bound, maxval=bound)
        b = jax.random.uniform(kb, (1, fan_out), dtype,
                               minval=-bound, maxval=bound)
        return wt, b

    w1t, b1 = linear(k1, input_dim, output_dim)   # fc1: Linear(in, out)
    w2t, b2 = linear(k2, output_dim, input_dim)   # fc2: Linear(out, in)

    params = {"w1t": w1t, "b1": b1, "w2t": w2t, "b2": b2,
              "fold": _fold_factor(input_dim)}

    f = params["fold"]
    if f > 1:
        eye = jnp.eye(f, dtype=dtype)
        params["w1t_f"] = jnp.kron(eye, w1t)          # (f*in, f*out) block-diag
        params["b1_f"] = jnp.tile(b1, (1, f))         # (1, f*out)
        params["w2t_f"] = jnp.kron(eye, w2t)          # (f*out, f*in) block-diag
        params["b2_f"] = jnp.tile(b2, (1, f))         # (1, f*in)
    return params


if __name__ == "__main__":
    # MyModule(use_origin_layer=True, input_dim=32, output_dim=64)
    input_dim, output_dim = 32, 64

    key = jax.random.PRNGKey(0)
    k_params, k_x, k_big, k_odd = jax.random.split(key, 4)
    params = init_my_module_params(k_params, input_dim, output_dim)

    def ref_fn(xx):
        return (xx @ params["w1t"] + params["b1"]) @ params["w2t"] + params["b2"]

    # --- small batch: folded lane-dense path, single full-array block ---
    x = jax.random.normal(k_x, (8, input_dim), jnp.float32)
    out = jax.block_until_ready(my_module_forward(x, params))
    assert out.shape == (8, input_dim)
    assert jnp.allclose(out, ref_fn(x), atol=1e-4, rtol=1e-4)

    # --- larger batch: folded + tiled path with a ragged final block
    #     (exercises grid masking; no wrapper pad / slice anywhere) ---
    x_big = jax.random.normal(k_big, (1000, input_dim), jnp.float32)
    out_big = jax.block_until_ready(
        my_module_forward(x_big, params, block_rows=64))
    assert out_big.shape == (1000, input_dim)
    assert jnp.allclose(out_big, ref_fn(x_big), atol=1e-4, rtol=1e-4)

    # --- batch not divisible by the fold factor: plain (B, in_dim) path ---
    x_odd = jax.random.normal(k_odd, (10, input_dim), jnp.float32)
    out_odd = jax.block_until_ready(my_module_forward(x_odd, params))
    assert out_odd.shape == (10, input_dim)
    assert jnp.allclose(out_odd, ref_fn(x_odd), atol=1e-4, rtol=1e-4)

    print("KERNEL_OK")
</pallas_src>

<mosaic_0001>
module attributes {stable_mosaic.version = 11 : i64} {
  func.func @_mlp_kernel(%arg0: i32, %arg1: memref<2x128xf32, #tpu.memory_space<vmem>>, %arg2: memref<128x256xf32, #tpu.memory_space<vmem>>, %arg3: memref<1x256xf32, #tpu.memory_space<vmem>>, %arg4: memref<256x128xf32, #tpu.memory_space<vmem>>, %arg5: memref<1x128xf32, #tpu.memory_space<vmem>>, %arg6: memref<2x128xf32, #tpu.memory_space<vmem>>) attributes {dimension_semantics = [#tpu.dimension_semantics<parallel>], iteration_bounds = array<i64: 1>, scalar_prefetch = 0 : i64, scratch_operands = 0 : i64, tpu.core_type = #tpu.core_type<tc>, window_params = [{transform_indices = @transform_0, window_bounds = array<i64: 2, 128>}, {pipeline_mode = #tpu.pipeline_mode<synchronous>, transform_indices = @transform_1, window_bounds = array<i64: 128, 256>}, {pipeline_mode = #tpu.pipeline_mode<synchronous>, transform_indices = @transform_2, window_bounds = array<i64: 1, 256>}, {pipeline_mode = #tpu.pipeline_mode<synchronous>, transform_indices = @transform_3, window_bounds = array<i64: 256, 128>}, {pipeline_mode = #tpu.pipeline_mode<synchronous>, transform_indices = @transform_4, window_bounds = array<i64: 1, 128>}, {transform_indices = @transform_5, window_bounds = array<i64: 2, 128>}]} {
    %c0 = arith.constant 0 : index
    %c0_0 = arith.constant 0 : index
    %0 = vector.load %arg1[%c0, %c0_0] : memref<2x128xf32, #tpu.memory_space<vmem>>, vector<2x128xf32>
    %c0_1 = arith.constant 0 : index
    %c0_2 = arith.constant 0 : index
    %1 = vector.load %arg2[%c0_1, %c0_2] : memref<128x256xf32, #tpu.memory_space<vmem>>, vector<128x256xf32>
    %cst = arith.constant dense<0.000000e+00> : vector<2x256xf32>
    %2 = tpu.matmul %0, %1, %cst {dimension_numbers = #tpu.dot_dimension_numbers<[1], [0], [0], [1], [0, 0, 1, 1], [], []>} : vector<2x128xf32>, vector<128x256xf32>, vector<2x256xf32> -> vector<2x256xf32>
    %c0_3 = arith.constant 0 : index
    %c0_4 = arith.constant 0 : index
    %3 = vector.load %arg3[%c0_3, %c0_4] : memref<1x256xf32, #tpu.memory_space<vmem>>, vector<1x256xf32>
    %4 = vector.broadcast %3 : vector<1x256xf32> to vector<2x256xf32>
    %5 = arith.addf %2, %4 : vector<2x256xf32>
    %c0_5 = arith.constant 0 : index
    %c0_6 = arith.constant 0 : index
    %6 = vector.load %arg4[%c0_5, %c0_6] : memref<256x128xf32, #tpu.memory_space<vmem>>, vector<256x128xf32>
    %cst_7 = arith.constant dense<0.000000e+00> : vector<2x128xf32>
    %7 = tpu.matmul %5, %6, %cst_7 {dimension_numbers = #tpu.dot_dimension_numbers<[1], [0], [0], [1], [0, 0, 1, 1], [], []>} : vector<2x256xf32>, vector<256x128xf32>, vector<2x128xf32> -> vector<2x128xf32>
    %c0_8 = arith.constant 0 : index
    %c0_9 = arith.constant 0 : index
    %8 = vector.load %arg5[%c0_8, %c0_9] : memref<1x128xf32, #tpu.memory_space<vmem>>, vector<1x128xf32>
    %9 = vector.broadcast %8 : vector<1x128xf32> to vector<2x128xf32>
    %10 = arith.addf %7, %9 : vector<2x128xf32>
    %c0_10 = arith.constant 0 : index
    %c0_11 = arith.constant 0 : index
    %11 = vector.load %arg6[%c0_10, %c0_11] : memref<2x128xf32, #tpu.memory_space<vmem>>, vector<2x128xf32>
    tpu.vector_store %arg6[%c0_10, %c0_11], %10 {strides = array<i32>} : memref<2x128xf32, #tpu.memory_space<vmem>>, vector<2x128xf32>,
    return
  }
  func.func @transform_0(%arg0: i32) -> (i32, i32) {
    %c0_i32 = arith.constant 0 : i32
    %c0_i32_0 = arith.constant 0 : i32
    return %arg0, %c0_i32 : i32, i32
  }
  func.func @transform_1(%arg0: i32) -> (i32, i32) {
    %c0_i32 = arith.constant 0 : i32
    %c0_i32_0 = arith.constant 0 : i32
    %c0_i32_1 = arith.constant 0 : i32
    return %c0_i32, %c0_i32_0 : i32, i32
  }
  func.func @transform_2(%arg0: i32) -> (i32, i32) {
    %c0_i32 = arith.constant 0 : i32
    %c0_i32_0 = arith.constant 0 : i32
    %c0_i32_1 = arith.constant 0 : i32
    return %c0_i32, %c0_i32_0 : i32, i32
  }
  func.func @transform_3(%arg0: i32) -> (i32, i32) {
    %c0_i32 = arith.constant 0 : i32
    %c0_i32_0 = arith.constant 0 : i32
    %c0_i32_1 = arith.constant 0 : i32
    return %c0_i32, %c0_i32_0 : i32, i32
  }
  func.func @transform_4(%arg0: i32) -> (i32, i32) {
    %c0_i32 = arith.constant 0 : i32
    %c0_i32_0 = arith.constant 0 : i32
    %c0_i32_1 = arith.constant 0 : i32
    return %c0_i32, %c0_i32_0 : i32, i32
  }
  func.func @transform_5(%arg0: i32) -> (i32, i32) {
    %c0_i32 = arith.constant 0 : i32
    %c0_i32_0 = arith.constant 0 : i32
    return %arg0, %c0_i32 : i32, i32
  }
}

</mosaic_0001>

<bundles_post_ra>
// kernel: tpu_custom_call.1
= control target key start
LH: loop header
LB: loop body
LE: loop exit
PB: predicated region body
PF: predicated region fallthrough
CT: control target
= control target key end

     0   :  { %10 = vsyncpa [#allocation3], 0  ;;  %s450_s0 = inlined_call_operand.hbm [shape: f32[2,128], index: 0, kind: input, shape index: {}]   ;;  %s451_s1 = inlined_call_operand.hbm [shape: f32[128,256], index: 1, kind: input, shape index: {}]   ;;  %s452_s2 = inlined_call_operand.hbm [shape: f32[1,256], index: 2, kind: input, shape index: {}]   ;;  %s453_s3 = inlined_call_operand.hbm [shape: f32[256,128], index: 3, kind: input, shape index: {}]   ;;  %s454_s4 = inlined_call_operand.vmem [shape: f32[1,128], index: 4, kind: input, shape index: {}]   ;;  %s455_s5 = inlined_call_operand.hbm [shape: f32[2,128], index: 5, kind: output, shape index: {}]  }
   0x1   :  { %11 = vsyncpa [#allocation6], 0 }
   0x2   :  { %12 = vsyncpa [#allocation9], 0  ;;  %s29_s20 = sshll.u32 %s451_s1, 4  ;;  %s30_s20 = int_to_ptr.hbm [resolvable:$true] %s29_s20 }
   0x3   :  { %13 = vsyncpa [#allocation4], 0  ;;  %s393_s21 = smov [#allocation5]   ;;  %s19_s25 = sshll.u32 %s450_s0, 4  ;;  %s20_s25 = int_to_ptr.hbm [resolvable:$true] %s19_s25 }
   0x4   :  { %s31_s22 = sshll.u32 %s393_s21, 4  ;;  %s394_s26 = smov 256   ;;  %s32_s22 = int_to_ptr.vmem [resolvable:$true] %s31_s22 }
   0x5   :  { %s395_s27 = smov 16   ;;  %s396_s28 = smov [#allocation2]  }
   0x6   :  { %37 = dma.hbm_to_vmem [thread:$0]  %s30_s20, 4096, %s32_s22, [#allocation6], %s394_s26, %s394_s26, %s395_s27  }
   0x7   :  { %s21_s29 = sshll.u32 %s396_s28, 4  ;;  %s43_s7 = sshll.u32 %s452_s2, 4  ;;  %s22_s29 = int_to_ptr.vmem [resolvable:$true] %s21_s29  ;;  %s44_s7 = int_to_ptr.hbm [resolvable:$true] %s43_s7 }
   0x8   :  { %24 = dma.hbm_to_vmem [thread:$0]  %s20_s25, 32, %s22_s29, [#allocation3]  }
   0x9   :  { %s53_s9 = sshll.u32 %s453_s3, 4  ;;  %s397_s10 = smov [#allocation7]   ;;  %s54_s9 = int_to_ptr.hbm [resolvable:$true] %s53_s9 }
   0xa   :  { %s45_s11 = sshll.u32 %s397_s10, 4  ;;  %s398_s0 = smov [#allocation8]   ;;  %s46_s11 = int_to_ptr.vmem [resolvable:$true] %s45_s11 }
   0xb   :  { %48 = dma.hbm_to_vmem [thread:$0]  %s44_s7, 32, %s46_s11, [#allocation6]  }
   0xc   :  { %s55_s12 = sshll.u32 %s398_s0, 4  ;;  %s399_s13 = smov 128   ;;  %s56_s12 = int_to_ptr.vmem [resolvable:$true] %s55_s12 }
   0xd   :  { %s400_s14 = smov 8  }
   0xe   :  { %61 = dma.hbm_to_vmem [thread:$0]  %s54_s9, 4096, %s56_s12, [#allocation9], %s399_s13, %s399_s13, %s400_s14  }
   0xf   :  { %385 = dma.done.wait [#allocation3], 32  }
  0x10   :  { %386 = vsyncadd [#allocation3], 4294967264 }
  0x11   :  { %387 = dma.done.wait [#allocation6], 4128  }
  0x12   :  { %388 = vsyncadd [#allocation6], 4294963168 }
  0x13   :  { %389 = dma.done.wait [#allocation9], 4096  }
  0x14   :  { %390 = vsyncadd [#allocation9], 4294963200  ;;  %v111_v0 = vld [vmem:[#allocation5 + $0xf0] sm:$0xff]  ;;  %v109_v1 = vld [vmem:[#allocation5 + $0xe0] sm:$0xff]  ;;  %s401_s15 = smov [#allocation10]   ;;  %s243_s19 = sshll.u32 %s455_s5, 4  ;;  %s244_s19 = int_to_ptr.hbm [resolvable:$true] %s243_s19 }
  0x15   :  { %v112_v2 = vld [vmem:[#allocation5 + $0xf8] sm:$0xff]  ;;  %119 = vmatpush.msra.mxu0 %v111_v0  ;;  %v110_v3 = vld [vmem:[#allocation5 + $0xe8] sm:$0xff]  ;;  %v107_v4 = vld [vmem:[#allocation5 + $0xd0] sm:$0xff]  ;;  %s241_s16 = sshll.u32 %s401_s15, 4  ;;  %s242_s16 = int_to_ptr.vmem [resolvable:$true] %s241_s16 }
  0x16   :  { %139 = vmatpush.msra.mxu1 %v112_v2  ;;  %v108_v5 = vld [vmem:[#allocation5 + $0xd8] sm:$0xff]  ;;  %v105_v6 = vld [vmem:[#allocation5 + $0xc0] sm:$0xff]  ;;  %v106_v7 = vld [vmem:[#allocation5 + $0xc8] sm:$0xff] }
  0x17   :  { %120 = vmatpush.msra.mxu0 %v109_v1  ;;  %v103_v8 = vld [vmem:[#allocation5 + $0xb0] sm:$0xff]  ;;  %v104_v9 = vld [vmem:[#allocation5 + $0xb8] sm:$0xff]  ;;  %v101_v10 = vld [vmem:[#allocation5 + $0xa0] sm:$0xff] }
  0x18   :  { %140 = vmatpush.msra.mxu1 %v110_v3  ;;  %v102_v11 = vld [vmem:[#allocation5 + $0xa8] sm:$0xff]  ;;  %v99_v12 = vld [vmem:[#allocation5 + $0x90] sm:$0xff]  ;;  %v100_v13 = vld [vmem:[#allocation5 + $0x98] sm:$0xff] }
  0x19   :  { %121 = vmatpush.msra.mxu0 %v107_v4  ;;  %v174_v14 = vld [vmem:[#allocation8 + $0x78] sm:$0xff]  ;;  %v173_v15 = vld [vmem:[#allocation8 + $0x70] sm:$0xff]  ;;  %v98_v18 = vld [vmem:[#allocation5 + $0x88] sm:$0xff] }
  0x1a   :  { %141 = vmatpush.msra.mxu1 %v108_v5  ;;  %v190_v16 = vld [vmem:[#allocation8 + $0xf8] sm:$0xff]  ;;  %195 = vmatpush.msra.mxu2 %v174_v14  ;;  %v189_v19 = vld [vmem:[#allocation8 + $0xf0] sm:$0xff]  ;;  %v172_v20 = vld [vmem:[#allocation8 + $0x68] sm:$0xff] }
  0x1b   :  { %122 = vmatpush.msra.mxu0 %v105_v6  ;;  %v97_v17 = vld [vmem:[#allocation5 + $0x80] sm:$0xff]  ;;  %215 = vmatpush.msra.mxu3 %v190_v16  ;;  %v188_v21 = vld [vmem:[#allocation8 + $0xe8] sm:$0xff]  ;;  %v96_v23 = vld [vmem:[#allocation5 + $0x78] sm:$0xff] }
  0x1c   :  { %142 = vmatpush.msra.mxu1 %v106_v7  ;;  %v95_v22 = vld [vmem:[#allocation5 + $0x70] sm:$0xff]  ;;  %196 = vmatpush.msra.mxu2 %v173_v15  ;;  %v171_v24 = vld [vmem:[#allocation8 + $0x60] sm:$0xff]  ;;  %v170_v28 = vld [vmem:[#allocation8 + $0x58] sm:$0xff] }
  0x1d   :  { %123 = vmatpush.msra.mxu0 %v103_v8  ;;  %216 = vmatpush.msra.mxu3 %v189_v19  ;;  %v187_v25 = vld [vmem:[#allocation8 + $0xe0] sm:$0xff]  ;;  %v186_v29 = vld [vmem:[#allocation8 + $0xd8] sm:$0xff]  ;;  %v91_v30 = vld [vmem:[#allocation5 + $0x50] sm:$0xff] }
  0x1e   :  { %143 = vmatpush.msra.mxu1 %v104_v9  ;;  %v93_v26 = vld [vmem:[#allocation5 + $0x60] sm:$0xff]  ;;  %v94_v27 = vld [vmem:[#allocation5 + $0x68] sm:$0xff]  ;;  %197 = vmatpush.msra.mxu2 %v172_v20  ;;  %v92_v31 = vld [vmem:[#allocation5 + $0x58] sm:$0xff] }
  0x1f   :  { %124 = vmatpush.msra.mxu0 %v101_v10  ;;  %217 = vmatpush.msra.mxu3 %v188_v21  ;;  %v169_v32 = vld [vmem:[#allocation8 + $0x50] sm:$0xff]  ;;  %v89_v34 = vld [vmem:[#allocation5 + $0x40] sm:$0xff]  ;;  %v90_v35 = vld [vmem:[#allocation5 + $0x48] sm:$0xff] }
  0x20   :  { %144 = vmatpush.msra.mxu1 %v102_v11  ;;  %198 = vmatpush.msra.mxu2 %v171_v24  ;;  %v185_v33 = vld [vmem:[#allocation8 + $0xd0] sm:$0xff]  ;;  %v168_v36 = vld [vmem:[#allocation8 + $0x48] sm:$0xff]  ;;  %v167_v40 = vld [vmem:[#allocation8 + $0x40] sm:$0xff] }
  0x21   :  { %125 = vmatpush.msra.mxu0 %v99_v12  ;;  %218 = vmatpush.msra.mxu3 %v187_v25  ;;  %v184_v37 = vld [vmem:[#allocation8 + $0xc8] sm:$0xff]  ;;  %v88_v39 = vld [vmem:[#allocation5 + $0x38] sm:$0xff]  ;;  %v183_v41 = vld [vmem:[#allocation8 + $0xc0] sm:$0xff] }
  0x22   :  { %145 = vmatpush.msra.mxu1 %v100_v13  ;;  %199 = vmatpush.msra.mxu2 %v170_v28  ;;  %v87_v38 = vld [vmem:[#allocation5 + $0x30] sm:$0xff]  ;;  %v85_v42 = vld [vmem:[#allocation5 + $0x20] sm:$0xff]  ;;  %v86_v43 = vld [vmem:[#allocation5 + $0x28] sm:$0xff] }
  0x23   :  { %126 = vmatpush.msra.mxu0 %v97_v17  ;;  %219 = vmatpush.msra.mxu3 %v186_v29  ;;  %v166_v44 = vld [vmem:[#allocation8 + $0x38] sm:$0xff]  ;;  %v83_v46 = vld [vmem:[#allocation5 + $0x10] sm:$0xff]  ;;  %v82_v51 = vld [vmem:[#allocation5 + $0x8] sm:$0xff] }
  0x24   :  { %146 = vmatpush.msra.mxu1 %v98_v18  ;;  %200 = vmatpush.msra.mxu2 %v169_v32  ;;  %v182_v45 = vld [vmem:[#allocation8 + $0xb8] sm:$0xff]  ;;  %v165_v48 = vld [vmem:[#allocation8 + $0x30] sm:$0xff]  ;;  %v164_v53 = vld [vmem:[#allocation8 + $0x28] sm:$0xff] }
  0x25   :  { %127 = vmatpush.msra.mxu0 %v95_v22  ;;  %220 = vmatpush.msra.mxu3 %v185_v33  ;;  %v84_v47 = vld [vmem:[#allocation5 + $0x18] sm:$0xff]  ;;  %v81_v50 = vld [vmem:[#allocation5] sm:$0xff]  ;;  %v180_v54 = vld [vmem:[#allocation8 + $0xa8] sm:$0xff] }
  0x26   :  { %147 = vmatpush.msra.mxu1 %v96_v23  ;;  %201 = vmatpush.msra.mxu2 %v168_v36  ;;  %v181_v49 = vld [vmem:[#allocation8 + $0xb0] sm:$0xff]  ;;  %v80_v52 = vld [vmem:[#allocation2] sm:$0x3]  ;;  %v163_v55 = vld [vmem:[#allocation8 + $0x20] sm:$0xff] }
  0x27   :  { %128 = vmatpush.msra.mxu0 %v93_v26  ;;  %221 = vmatpush.msra.mxu3 %v184_v37  ;;  %v179_v56 = vld [vmem:[#allocation8 + $0xa0] sm:$0xff]  ;;  %v162_v57 = vld [vmem:[#allocation8 + $0x18] sm:$0xff]  ;;  %v161_v59 = vld [vmem:[#allocation8 + $0x10] sm:$0xff] }
  0x28   :  { %148 = vmatpush.msra.mxu1 %v94_v27  ;;  %202 = vmatpush.msra.mxu2 %v167_v40  ;;  %v178_v58 = vld [vmem:[#allocation8 + $0x98] sm:$0xff]  ;;  %v160_v60 = vld [vmem:[#allocation8 + $0x8] sm:$0xff]  ;;  %v177_v61 = vld [vmem:[#allocation8 + $0x90] sm:$0xff] }
  0x29   :  { %129 = vmatpush.msra.mxu0 %v91_v30  ;;  %222 = vmatpush.msra.mxu3 %v183_v41  ;;  %v159_v62 = vld [vmem:[#allocation8] sm:$0xff]  ;;  %v176_v63 = vld [vmem:[#allocation8 + $0x88] sm:$0xff]  ;;  %v113_v1 = vld [vmem:[#allocation7] sm:$0x3] }
  0x2a   :  { %149 = vmatpush.msra.mxu1 %v92_v31  ;;  %203 = vmatpush.msra.mxu2 %v166_v44  ;;  %v175_v0 = vld [vmem:[#allocation8 + $0x80] sm:$0xff]  ;;  %v115_v2 = vperm.slane %v113_v1, 0  ;;  %v116_v3 = vperm.slane %v113_v1, 1  ;;  %v264_v8 = vld [vmem:[%s454_s4] ss:$0 sm:$0xff] }
  0x2b   :  { %130 = vmatpush.msra.mxu0 %v89_v34  ;;  %223 = vmatpush.msra.mxu3 %v182_v45 }
  0x2c   :  { %150 = vmatpush.msra.mxu1 %v90_v35  ;;  %204 = vmatpush.msra.mxu2 %v165_v48 }
  0x2d   :  { %131 = vmatpush.msra.mxu0 %v87_v38  ;;  %224 = vmatpush.msra.mxu3 %v181_v49 }
  0x2e   :  { %151 = vmatpush.msra.mxu1 %v88_v39  ;;  %205 = vmatpush.msra.mxu2 %v164_v53 }
  0x2f   :  { %132 = vmatpush.msra.mxu0 %v85_v42  ;;  %225 = vmatpush.msra.mxu3 %v180_v54 }
  0x30   :  { %152 = vmatpush.msra.mxu1 %v86_v43  ;;  %206 = vmatpush.msra.mxu2 %v163_v55 }
  0x31   :  { %133 = vmatpush.msra.mxu0 %v83_v46  ;;  %226 = vmatpush.msra.mxu3 %v179_v56 }
  0x32   :  { %153 = vmatpush.msra.mxu1 %v84_v47  ;;  %207 = vmatpush.msra.mxu2 %v162_v57 }
  0x33   :  { %134 = vmatpush.msra.mxu0 %v81_v50  ;;  %227 = vmatpush.msra.mxu3 %v178_v58 }
  0x34   :  { %154 = vmatpush.msra.mxu1 %v82_v51  ;;  %135 = vmatmul.f32.vlgmr.msra.gmra.mxu0 %v80_v52 }
  0x35   :  { %155 = vmatmul.f32.vlgmr.msra.gmra.mxu1 %v80_v52  ;;  %208 = vmatpush.msra.mxu2 %v161_v59 }
  0x36   :  { %228 = vmatpush.msra.mxu3 %v177_v61 }
  0x37   :  { %209 = vmatpush.msra.mxu2 %v160_v60 }
  0x38   :  { %229 = vmatpush.msra.mxu3 %v176_v63 }
  0x39   :  { %210 = vmatpush.msra.mxu2 %v159_v62 }
  0x3a   :  { %230 = vmatpush.msra.mxu3 %v175_v0 }
  0xb1   :  { %v136_v4 = vpop.f32.mrf.mxu0 }
  0xb2   :  { %v156_v5 = vpop.f32.mrf.mxu1  ;;  %v137_v6 = vadd.f32 %v136_v4, %v115_v2 }
  0xb3   :  { %v157_v7 = vadd.f32 %v156_v5, %v116_v3 }
  0xb4   :  { %211 = vmatmul.f32.vlgmr.msra.gmra.mxu2 %v137_v6 }
  0xb5   :  { %231 = vmatmul.f32.vlgmr.msra.gmra.mxu3 %v157_v7 }
 0x137   :  { %v212_v9 = vpop.f32.mrf.mxu2 }
 0x138   :  { %v232_v10 = vpop.f32.mrf.mxu3  ;;  %v213_v11 = vadd.f32 %v264_v8, %v212_v9 }
 0x13a   :  { %v233_v12 = vadd.f32 %v232_v10, %v213_v11 }
 0x13c   :  { %235 = vst [vmem:[#allocation10] sm:$0x3] %v233_v12 }
 0x13d   :  { %246 = dma.vmem_to_hbm [thread:$0]  %s242_s16, 32, %s244_s19, [#allocation4]  }
 0x13e   :  { %391 = dma.done.wait [#allocation4], 32  }
 0x13f   :  { %392 = vsyncadd [#allocation4], 4294967264 }
 0x140   :  { %251 = vsyncpa [#allocation3], 1 }
 0x141   :  { %252 = vsyncpa [#allocation6], 1 }
 0x142   :  { %253 = vsyncpa [#allocation9], 1 }
 0x143   :  { %254 = vsyncpa [#allocation4], 1 }

</bundles_post_ra>
